<compile_context>
chip_gen: v5e
topology: v5e:2x2
jax: 0.10.0
libtpu: 0.0.40
codegen_flags: <defaults>
</compile_context>

<pallas_src>
import math

import jax
import jax.numpy as jnp
import numpy as np
from jax.experimental import pallas as pl
from jax.experimental.pallas import tpu as pltpu


def _active_options(M_Space, K_Space):
    """(column-in-arch_prob, Mn) for every codebook option forward() visits."""
    opts = []
    for j in range(len(K_Space)):
        for m in range(len(M_Space)):
            if j == 0 and m != 0:
                break
            opts.append((j * len(M_Space) + m, M_Space[m]))
    return opts


def _slot_layout(options, dim):
    """Flatten (option, sub-vector) pairs into slots.

    Returns:
      slot_opt[s]  : which codebook the slot gathers from
      slot_col[s]  : which arch_prob column weights the slot
      slot_mask[s] : (dim,) f32 lane mask of the slot's sub-vector range
    """
    slot_opt, slot_col, masks = [], [], []
    lane = np.arange(dim)
    for o, (col, mn) in enumerate(options):
        plen = dim // mn
        for i in range(mn):
            slot_opt.append(o)
            slot_col.append(col)
            masks.append(((lane >= i * plen) & (lane < (i + 1) * plen))
                         .astype(np.float32))
    return slot_opt, np.asarray(slot_col, np.int32), np.stack(masks, axis=0)


def _make_kernel(n_opt, slot_opt, rows_per_tile, pattern_blocks, dim):
    S = len(slot_opt)
    n_groups = rows_per_tile // 8

    def kernel(codes_sm, w_ref, *rest):
        # codes_sm : SMEM (B_pad*F*S,) int32 -- pre-gathered codebook rows per row
        # w_ref    : VMEM (pattern_blocks*S, 8, D) f32 -- weighted lane masks
        # rest     : n_opt codebook refs (rows_o, D) + (rows_per_tile, D) output
        cb_refs = rest[:n_opt]
        out_ref = rest[n_opt]

        tile_row0 = pl.program_id(0) * rows_per_tile

        # If the 8-row field pattern is identical for every group
        # (pattern_blocks == 1, i.e. F divides 8) the weight slabs are
        # loop-invariant: hoist the loads out of the group loop.
        w_static = ([w_ref[s] for s in range(S)]
                    if pattern_blocks == 1 else None)

        def group_body(g, carry):
            base = (tile_row0 + g * 8) * S        # SMEM offset of (row0, slot 0)
            acc = jnp.zeros((8, dim), jnp.float32)
            for s in range(S):
                o = slot_opt[s]
                # Gather 8 codebook rows (one per sublane of this group) and
                # pack them into one dense (8, D) tile.
                rows = [cb_refs[o][pl.ds(codes_sm[base + k * S + s], 1), :]
                        for k in range(8)]
                gathered = jnp.concatenate(rows, axis=0).astype(jnp.float32)
                if w_static is not None:
                    w = w_static[s]
                else:
                    w = w_ref[(g % pattern_blocks) * S + s]
                acc = acc + gathered * w           # dense (8, D) FMA
            r0 = pl.multiple_of(g * 8, 8)
            out_ref[pl.ds(r0, 8), :] = acc.astype(out_ref.dtype)  # full-vreg store
            return carry

        jax.lax.fori_loop(0, n_groups, group_body, 0)

    return kernel


def mix_size_num_quat_embedding_fwd(
    x, arch_prob, offsets_a, code_tables, codebooks, *,
    M_Space, K_Space, embed_dim, batch_tile=None, out_dtype=jnp.float32,
):
    """Forward of MixSizeNumQuatEmbedding (flag != 0: arch_prob given).

    x           : (B, F) int      per-field raw indices
    arch_prob   : (F, len(K)*len(M)) f32 architecture weights
    offsets_a   : (F,) int        field offsets (0, cumsum(field_dims)[:-1])
    code_tables : list (per active option) of (size, Mn) int code tables
    codebooks   : list (per active option) of (rows_o, embed_dim) float tables
    returns     : (B, F, embed_dim) out_dtype
    """
    # TODO(synk): flag == 0 applies F.gumbel_softmax(arch_p * prior) -- a
    # stochastic op on a tiny (F, C) tensor; do it in plain JAX outside the kernel.
    B, F = x.shape
    D = int(embed_dim)
    assert D % 128 == 0, "embed_dim must be a multiple of 128 (lane-dense rows)"
    options = _active_options(M_Space, K_Space)
    n_opt = len(options)
    assert len(code_tables) == n_opt and len(codebooks) == n_opt
    for _, mn in options:
        assert D % mn == 0, "embed_dim must be divisible by every M_Space entry"

    out_dtype = jnp.dtype(out_dtype)
    slot_opt, slot_col, slot_mask = _slot_layout(options, D)
    S = len(slot_opt)

    # ---- batch tile: rows-per-tile must be a multiple of 8 (full-vreg groups) --
    need = 8 // math.gcd(F, 8)            # batch_tile must be a multiple of this
    if batch_tile is None:
        # aim for a >=512 KiB output block so per-grid-step overhead is amortized
        rows_target = max(8, min((512 * 1024) // (D * out_dtype.itemsize), 4096))
        batch_tile = max(1, rows_target // F)
    batch_tile = max(need, (int(batch_tile) // need) * need)
    batch_tile = min(batch_tile, -(-B // need) * need)
    B_pad = -(-B // batch_tile) * batch_tile
    rows_per_tile = batch_tile * F
    assert rows_per_tile % 8 == 0

    # field pattern of an 8-row group repeats every P groups (P = lcm(F,8)/8)
    P = (8 * F // math.gcd(F, 8)) // 8

    # ---- wrapper-side prep: the kernel body is pure gather + dense FMA ---------
    x = jnp.asarray(x, jnp.int32)
    if B_pad != B:                         # pad with index 0 of every field (valid)
        x = jnp.concatenate([x, jnp.zeros((B_pad - B, F), jnp.int32)], axis=0)
    x_flat = (x + jnp.asarray(offsets_a, jnp.int32)[None, :]).reshape(-1)

    # Pre-gathered codes: (B_pad*F, S) int32, flattened row-major so the kernel
    # reads codes[r*S + s] as a single SMEM scalar.
    # TODO(synk): for very large batches tile these into SMEM per grid step
    # (blocked SMEM in_spec) instead of scalar-prefetching the whole batch.
    per_opt = [jnp.take(jnp.asarray(ct, jnp.int32), x_flat, axis=0)
               for ct in code_tables]
    codes = jnp.concatenate(per_opt, axis=1).reshape(-1)

    # Weighted lane masks, one (8, D) slab per (pattern block, slot).
    arch = jnp.asarray(arch_prob, jnp.float32)
    fields = (np.arange(P * 8) % F).reshape(P, 8)              # static
    w_pf = arch[fields][:, :, slot_col]                        # (P, 8, S)
    w_slab = (jnp.transpose(w_pf, (0, 2, 1))[:, :, :, None]
              * jnp.asarray(slot_mask)[None, :, None, :])      # (P, S, 8, D)
    w_slab = w_slab.reshape(P * S, 8, D).astype(jnp.float32)

    # Codebooks stay VMEM-resident (constant index_map).  Rows are cast to f32
    # after each gather, so bf16 codebooks are fine for the FMA path.
    # TODO(synk): for production-size codebooks (tens of MiB, esp. v7x 64 MiB
    # VMEM) pass them in bf16 and/or keep them in HBM (memory_space=pl.ANY)
    # with a manual row-gather DMA; the demo tables are ~1 MiB so residency wins.
    cbs = [jnp.asarray(cb) for cb in codebooks]

    kernel = _make_kernel(n_opt, slot_opt, rows_per_tile, P, D)

    resident = sum(int(np.prod(c.shape)) * c.dtype.itemsize for c in cbs)
    resident += int(np.prod(w_slab.shape)) * 4
    out_block = rows_per_tile * D * out_dtype.itemsize
    vmem_limit = int(min(max(2 * (resident + out_block) + (4 << 20), 32 << 20),
                         64 << 20))

    grid_spec = pltpu.PrefetchScalarGridSpec(
        num_scalar_prefetch=1,
        grid=(B_pad // batch_tile,),
        in_specs=(
            [pl.BlockSpec(w_slab.shape, lambda i, *_: (0, 0, 0))]
            + [pl.BlockSpec(cb.shape, lambda i, *_: (0, 0)) for cb in cbs]
        ),
        out_specs=pl.BlockSpec((rows_per_tile, D), lambda i, *_: (i, 0)),
    )

    out = pl.pallas_call(
        kernel,
        out_shape=jax.ShapeDtypeStruct((B_pad * F, D), out_dtype),
        grid_spec=grid_spec,
        compiler_params=pltpu.CompilerParams(
            dimension_semantics=("parallel",),
            vmem_limit_bytes=vmem_limit),
    )(codes, w_slab, *cbs)

    out = out.reshape(B_pad, F, D)
    return out[:B] if B_pad != B else out


def _reference(x, arch_prob, offsets_a, code_tables, codebooks,
               M_Space, K_Space, embed_dim):
    """Pure-JAX replica of the torch forward (flag != 0)."""
    options = _active_options(M_Space, K_Space)
    xf = x + offsets_a[None, :]
    B, F = xf.shape
    emb = jnp.zeros((B, F, embed_dim), jnp.float32)
    for (col, mn), codes, cb in zip(options, code_tables, codebooks):
        plen = embed_dim // mn
        idx = jnp.take(codes, xf, axis=0)                    # (B, F, Mn)
        w = arch_prob[:, col]                                # (F,)
        cbf = jnp.asarray(cb, jnp.float32)
        for i in range(mn):
            rows = jnp.take(cbf, idx[:, :, i], axis=0)       # (B, F, D)
            emb = emb.at[:, :, i * plen:(i + 1) * plen].add(
                w[None, :, None] * rows[:, :, i * plen:(i + 1) * plen])
    return emb


if __name__ == "__main__":
    # Module config (small, deterministic).
    field_dims = (10, 20, 30, 40)
    M_Space = (1, 2)            # sub-vector counts
    K_Space = (1, 16)           # codebook sizes (K_Space[0] slot uses `threshold`)
    threshold = 500
    embed_dim = 128             # multiple of 128 -> lane-dense rows
    batch = 32

    num_fields = len(field_dims)
    size = int(sum(field_dims))
    n_cols = len(M_Space) * len(K_Space)
    options = _active_options(M_Space, K_Space)       # [(0,1), (2,1), (3,2)]

    # prior_flag == all-ones -> every field participates in every option.
    num_active = num_fields
    offsets_a = jnp.asarray(
        np.concatenate(([0], np.cumsum(field_dims)[:-1])).astype(np.int32))

    key = jax.random.PRNGKey(0)
    keys = jax.random.split(key, 2 + 2 * len(options) + num_fields)
    k_iter = iter(keys)

    # arch_prob passed directly (flag != 0 path); softmax so weights look real.
    arch_prob = jax.nn.softmax(
        jax.random.normal(next(k_iter), (num_fields, n_cols), jnp.float32),
        axis=-1)

    # Codebooks + integer code tables per active option.
    codebooks, code_tables = [], []
    for (col, mn) in options:
        j = col // len(M_Space)
        rows = num_active * threshold if j == 0 else num_active * K_Space[j]
        codebooks.append(
            jax.random.normal(next(k_iter), (rows, embed_dim), jnp.float32))
        code_tables.append(
            jax.random.randint(next(k_iter), (size, mn), 0, rows,
                               dtype=jnp.int32))

    # Per-field raw indices: x[:, f] in [0, field_dims[f]).
    xcols = [jax.random.randint(next(k_iter), (batch, 1), 0, fd, dtype=jnp.int32)
             for fd in field_dims]
    x = jnp.concatenate(xcols, axis=1)                 # (batch, num_fields)

    # Run 1: explicit small tile -> 4-step grid (exercises pipelining / index_map).
    out1 = mix_size_num_quat_embedding_fwd(
        x, arch_prob, offsets_a, code_tables, codebooks,
        M_Space=M_Space, K_Space=K_Space, embed_dim=embed_dim, batch_tile=8)
    out1 = jax.block_until_ready(out1)
    ref1 = _reference(x, arch_prob, offsets_a, code_tables, codebooks,
                      M_Space, K_Space, embed_dim)
    np.testing.assert_allclose(np.asarray(out1), np.asarray(ref1),
                               rtol=1e-5, atol=1e-5)
    assert out1.shape == (batch, num_fields, embed_dim)

    # Run 2: default (large) tile + odd batch -> exercises batch padding path.
    xb = x[:29]
    out2 = mix_size_num_quat_embedding_fwd(
        xb, arch_prob, offsets_a, code_tables, codebooks,
        M_Space=M_Space, K_Space=K_Space, embed_dim=embed_dim)
    out2 = jax.block_until_ready(out2)
    ref2 = _reference(xb, arch_prob, offsets_a, code_tables, codebooks,
                      M_Space, K_Space, embed_dim)
    np.testing.assert_allclose(np.asarray(out2), np.asarray(ref2),
                               rtol=1e-5, atol=1e-5)
    assert out2.shape == (29, num_fields, embed_dim)

    print("KERNEL_OK")
</pallas_src>

<mosaic_0001>
module attributes {stable_mosaic.version = 11 : i64} {
  func.func @kernel(%arg0: i32, %arg1: memref<512xi32, #tpu.memory_space<smem>>, %arg2: memref<4x8x128xf32, #tpu.memory_space<vmem>>, %arg3: memref<2000x128xf32, #tpu.memory_space<vmem>>, %arg4: memref<64x128xf32, #tpu.memory_space<vmem>>, %arg5: memref<64x128xf32, #tpu.memory_space<vmem>>, %arg6: memref<32x128xf32, #tpu.memory_space<vmem>>) attributes {dimension_semantics = [#tpu.dimension_semantics<parallel>], iteration_bounds = array<i64: 4>, scalar_prefetch = 1 : i64, scratch_operands = 0 : i64, tpu.core_type = #tpu.core_type<tc>, window_params = [{pipeline_mode = #tpu.pipeline_mode<synchronous>, transform_indices = @transform_0, window_bounds = array<i64: 4, 8, 128>}, {pipeline_mode = #tpu.pipeline_mode<synchronous>, transform_indices = @transform_1, window_bounds = array<i64: 2000, 128>}, {pipeline_mode = #tpu.pipeline_mode<synchronous>, transform_indices = @transform_2, window_bounds = array<i64: 64, 128>}, {pipeline_mode = #tpu.pipeline_mode<synchronous>, transform_indices = @transform_3, window_bounds = array<i64: 64, 128>}, {transform_indices = @transform_4, window_bounds = array<i64: 32, 128>}]} {
    %c32_i32 = arith.constant 32 : i32
    %0 = arith.muli %arg0, %c32_i32 : i32
    %c0 = arith.constant 0 : index
    %c0_0 = arith.constant 0 : index
    %c0_1 = arith.constant 0 : index
    %1 = vector.load %arg2[%c0, %c0_0, %c0_1] : memref<4x8x128xf32, #tpu.memory_space<vmem>>, vector<1x8x128xf32>
    %2 = vector.shape_cast %1 : vector<1x8x128xf32> to vector<8x128xf32>
    %c1 = arith.constant 1 : index
    %c0_2 = arith.constant 0 : index
    %c0_3 = arith.constant 0 : index
    %3 = vector.load %arg2[%c1, %c0_2, %c0_3] : memref<4x8x128xf32, #tpu.memory_space<vmem>>, vector<1x8x128xf32>
    %4 = vector.shape_cast %3 : vector<1x8x128xf32> to vector<8x128xf32>
    %c2 = arith.constant 2 : index
    %c0_4 = arith.constant 0 : index
    %c0_5 = arith.constant 0 : index
    %5 = vector.load %arg2[%c2, %c0_4, %c0_5] : memref<4x8x128xf32, #tpu.memory_space<vmem>>, vector<1x8x128xf32>
    %6 = vector.shape_cast %5 : vector<1x8x128xf32> to vector<8x128xf32>
    %c3 = arith.constant 3 : index
    %c0_6 = arith.constant 0 : index
    %c0_7 = arith.constant 0 : index
    %7 = vector.load %arg2[%c3, %c0_6, %c0_7] : memref<4x8x128xf32, #tpu.memory_space<vmem>>, vector<1x8x128xf32>
    %8 = vector.shape_cast %7 : vector<1x8x128xf32> to vector<8x128xf32>
    %c0_i32 = arith.constant 0 : i32
    %c4_i32 = arith.constant 4 : i32
    %9 = arith.addi %c0_i32, %c4_i32 : i32
    %c1_i32 = arith.constant 1 : i32
    scf.for %arg7 = %c0_i32 to %9 step %c1_i32  : i32 {
      %c8_i32 = arith.constant 8 : i32
      %10 = arith.muli %arg7, %c8_i32 : i32
      %11 = arith.addi %0, %10 : i32
      %c4_i32_9 = arith.constant 4 : i32
      %12 = arith.muli %11, %c4_i32_9 : i32
      %cst = arith.constant 0.000000e+00 : f32
      %13 = vector.broadcast %cst : f32 to vector<8x128xf32>
      %c0_i32_10 = arith.constant 0 : i32
      %14 = arith.addi %12, %c0_i32_10 : i32
      %c0_i32_11 = arith.constant 0 : i32
      %15 = arith.addi %14, %c0_i32_11 : i32
      %16 = arith.index_cast %15 : i32 to index
      %17 = memref.load %arg1[%16] : memref<512xi32, #tpu.memory_space<smem>>
      %18 = arith.index_cast %17 : i32 to index
      %c0_12 = arith.constant 0 : index
      %19 = vector.load %arg3[%18, %c0_12] : memref<2000x128xf32, #tpu.memory_space<vmem>>, vector<1x128xf32>
      %c4_i32_13 = arith.constant 4 : i32
      %20 = arith.addi %12, %c4_i32_13 : i32
      %c0_i32_14 = arith.constant 0 : i32
      %21 = arith.addi %20, %c0_i32_14 : i32
      %22 = arith.index_cast %21 : i32 to index
      %23 = memref.load %arg1[%22] : memref<512xi32, #tpu.memory_space<smem>>
      %24 = arith.index_cast %23 : i32 to index
      %c0_15 = arith.constant 0 : index
      %25 = vector.load %arg3[%24, %c0_15] : memref<2000x128xf32, #tpu.memory_space<vmem>>, vector<1x128xf32>
      %c8_i32_16 = arith.constant 8 : i32
      %26 = arith.addi %12, %c8_i32_16 : i32
      %c0_i32_17 = arith.constant 0 : i32
      %27 = arith.addi %26, %c0_i32_17 : i32
      %28 = arith.index_cast %27 : i32 to index
      %29 = memref.load %arg1[%28] : memref<512xi32, #tpu.memory_space<smem>>
      %30 = arith.index_cast %29 : i32 to index
      %c0_18 = arith.constant 0 : index
      %31 = vector.load %arg3[%30, %c0_18] : memref<2000x128xf32, #tpu.memory_space<vmem>>, vector<1x128xf32>
      %c12_i32 = arith.constant 12 : i32
      %32 = arith.addi %12, %c12_i32 : i32
      %c0_i32_19 = arith.constant 0 : i32
      %33 = arith.addi %32, %c0_i32_19 : i32
      %34 = arith.index_cast %33 : i32 to index
      %35 = memref.load %arg1[%34] : memref<512xi32, #tpu.memory_space<smem>>
      %36 = arith.index_cast %35 : i32 to index
      %c0_20 = arith.constant 0 : index
      %37 = vector.load %arg3[%36, %c0_20] : memref<2000x128xf32, #tpu.memory_space<vmem>>, vector<1x128xf32>
      %c16_i32 = arith.constant 16 : i32
      %38 = arith.addi %12, %c16_i32 : i32
      %c0_i32_21 = arith.constant 0 : i32
      %39 = arith.addi %38, %c0_i32_21 : i32
      %40 = arith.index_cast %39 : i32 to index
      %41 = memref.load %arg1[%40] : memref<512xi32, #tpu.memory_space<smem>>
      %42 = arith.index_cast %41 : i32 to index
      %c0_22 = arith.constant 0 : index
      %43 = vector.load %arg3[%42, %c0_22] : memref<2000x128xf32, #tpu.memory_space<vmem>>, vector<1x128xf32>
      %c20_i32 = arith.constant 20 : i32
      %44 = arith.addi %12, %c20_i32 : i32
      %c0_i32_23 = arith.constant 0 : i32
      %45 = arith.addi %44, %c0_i32_23 : i32
      %46 = arith.index_cast %45 : i32 to index
      %47 = memref.load %arg1[%46] : memref<512xi32, #tpu.memory_space<smem>>
      %48 = arith.index_cast %47 : i32 to index
      %c0_24 = arith.constant 0 : index
      %49 = vector.load %arg3[%48, %c0_24] : memref<2000x128xf32, #tpu.memory_space<vmem>>, vector<1x128xf32>
      %c24_i32 = arith.constant 24 : i32
      %50 = arith.addi %12, %c24_i32 : i32
      %c0_i32_25 = arith.constant 0 : i32
      %51 = arith.addi %50, %c0_i32_25 : i32
      %52 = arith.index_cast %51 : i32 to index
      %53 = memref.load %arg1[%52] : memref<512xi32, #tpu.memory_space<smem>>
      %54 = arith.index_cast %53 : i32 to index
      %c0_26 = arith.constant 0 : index
      %55 = vector.load %arg3[%54, %c0_26] : memref<2000x128xf32, #tpu.memory_space<vmem>>, vector<1x128xf32>
      %c28_i32 = arith.constant 28 : i32
      %56 = arith.addi %12, %c28_i32 : i32
      %c0_i32_27 = arith.constant 0 : i32
      %57 = arith.addi %56, %c0_i32_27 : i32
      %58 = arith.index_cast %57 : i32 to index
      %59 = memref.load %arg1[%58] : memref<512xi32, #tpu.memory_space<smem>>
      %60 = arith.index_cast %59 : i32 to index
      %c0_28 = arith.constant 0 : index
      %61 = vector.load %arg3[%60, %c0_28] : memref<2000x128xf32, #tpu.memory_space<vmem>>, vector<1x128xf32>
      %62 = tpu.concatenate %19, %25, %31, %37, %43, %49, %55, %61 in 0 : vector<1x128xf32>, vector<1x128xf32>, vector<1x128xf32>, vector<1x128xf32>, vector<1x128xf32>, vector<1x128xf32>, vector<1x128xf32>, vector<1x128xf32> -> vector<8x128xf32>
      %63 = arith.mulf %62, %2 : vector<8x128xf32>
      %64 = arith.addf %13, %63 : vector<8x128xf32>
      %c0_i32_29 = arith.constant 0 : i32
      %65 = arith.addi %12, %c0_i32_29 : i32
      %c1_i32_30 = arith.constant 1 : i32
      %66 = arith.addi %65, %c1_i32_30 : i32
      %67 = arith.index_cast %66 : i32 to index
      %68 = memref.load %arg1[%67] : memref<512xi32, #tpu.memory_space<smem>>
      %69 = arith.index_cast %68 : i32 to index
      %c0_31 = arith.constant 0 : index
      %70 = vector.load %arg4[%69, %c0_31] : memref<64x128xf32, #tpu.memory_space<vmem>>, vector<1x128xf32>
      %c4_i32_32 = arith.constant 4 : i32
      %71 = arith.addi %12, %c4_i32_32 : i32
      %c1_i32_33 = arith.constant 1 : i32
      %72 = arith.addi %71, %c1_i32_33 : i32
      %73 = arith.index_cast %72 : i32 to index
      %74 = memref.load %arg1[%73] : memref<512xi32, #tpu.memory_space<smem>>
      %75 = arith.index_cast %74 : i32 to index
      %c0_34 = arith.constant 0 : index
      %76 = vector.load %arg4[%75, %c0_34] : memref<64x128xf32, #tpu.memory_space<vmem>>, vector<1x128xf32>
      %c8_i32_35 = arith.constant 8 : i32
      %77 = arith.addi %12, %c8_i32_35 : i32
      %c1_i32_36 = arith.constant 1 : i32
      %78 = arith.addi %77, %c1_i32_36 : i32
      %79 = arith.index_cast %78 : i32 to index
      %80 = memref.load %arg1[%79] : memref<512xi32, #tpu.memory_space<smem>>
      %81 = arith.index_cast %80 : i32 to index
      %c0_37 = arith.constant 0 : index
      %82 = vector.load %arg4[%81, %c0_37] : memref<64x128xf32, #tpu.memory_space<vmem>>, vector<1x128xf32>
      %c12_i32_38 = arith.constant 12 : i32
      %83 = arith.addi %12, %c12_i32_38 : i32
      %c1_i32_39 = arith.constant 1 : i32
      %84 = arith.addi %83, %c1_i32_39 : i32
      %85 = arith.index_cast %84 : i32 to index
      %86 = memref.load %arg1[%85] : memref<512xi32, #tpu.memory_space<smem>>
      %87 = arith.index_cast %86 : i32 to index
      %c0_40 = arith.constant 0 : index
      %88 = vector.load %arg4[%87, %c0_40] : memref<64x128xf32, #tpu.memory_space<vmem>>, vector<1x128xf32>
      %c16_i32_41 = arith.constant 16 : i32
      %89 = arith.addi %12, %c16_i32_41 : i32
      %c1_i32_42 = arith.constant 1 : i32
      %90 = arith.addi %89, %c1_i32_42 : i32
      %91 = arith.index_cast %90 : i32 to index
      %92 = memref.load %arg1[%91] : memref<512xi32, #tpu.memory_space<smem>>
      %93 = arith.index_cast %92 : i32 to index
      %c0_43 = arith.constant 0 : index
      %94 = vector.load %arg4[%93, %c0_43] : memref<64x128xf32, #tpu.memory_space<vmem>>, vector<1x128xf32>
      %c20_i32_44 = arith.constant 20 : i32
      %95 = arith.addi %12, %c20_i32_44 : i32
      %c1_i32_45 = arith.constant 1 : i32
      %96 = arith.addi %95, %c1_i32_45 : i32
      %97 = arith.index_cast %96 : i32 to index
      %98 = memref.load %arg1[%97] : memref<512xi32, #tpu.memory_space<smem>>
      %99 = arith.index_cast %98 : i32 to index
      %c0_46 = arith.constant 0 : index
      %100 = vector.load %arg4[%99, %c0_46] : memref<64x128xf32, #tpu.memory_space<vmem>>, vector<1x128xf32>
      %c24_i32_47 = arith.constant 24 : i32
      %101 = arith.addi %12, %c24_i32_47 : i32
      %c1_i32_48 = arith.constant 1 : i32
      %102 = arith.addi %101, %c1_i32_48 : i32
      %103 = arith.index_cast %102 : i32 to index
      %104 = memref.load %arg1[%103] : memref<512xi32, #tpu.memory_space<smem>>
      %105 = arith.index_cast %104 : i32 to index
      %c0_49 = arith.constant 0 : index
      %106 = vector.load %arg4[%105, %c0_49] : memref<64x128xf32, #tpu.memory_space<vmem>>, vector<1x128xf32>
      %c28_i32_50 = arith.constant 28 : i32
      %107 = arith.addi %12, %c28_i32_50 : i32
      %c1_i32_51 = arith.constant 1 : i32
      %108 = arith.addi %107, %c1_i32_51 : i32
      %109 = arith.index_cast %108 : i32 to index
      %110 = memref.load %arg1[%109] : memref<512xi32, #tpu.memory_space<smem>>
      %111 = arith.index_cast %110 : i32 to index
      %c0_52 = arith.constant 0 : index
      %112 = vector.load %arg4[%111, %c0_52] : memref<64x128xf32, #tpu.memory_space<vmem>>, vector<1x128xf32>
      %113 = tpu.concatenate %70, %76, %82, %88, %94, %100, %106, %112 in 0 : vector<1x128xf32>, vector<1x128xf32>, vector<1x128xf32>, vector<1x128xf32>, vector<1x128xf32>, vector<1x128xf32>, vector<1x128xf32>, vector<1x128xf32> -> vector<8x128xf32>
      %114 = arith.mulf %113, %4 : vector<8x128xf32>
      %115 = arith.addf %64, %114 : vector<8x128xf32>
      %c0_i32_53 = arith.constant 0 : i32
      %116 = arith.addi %12, %c0_i32_53 : i32
      %c2_i32 = arith.constant 2 : i32
      %117 = arith.addi %116, %c2_i32 : i32
      %118 = arith.index_cast %117 : i32 to index
      %119 = memref.load %arg1[%118] : memref<512xi32, #tpu.memory_space<smem>>
      %120 = arith.index_cast %119 : i32 to index
      %c0_54 = arith.constant 0 : index
      %121 = vector.load %arg5[%120, %c0_54] : memref<64x128xf32, #tpu.memory_space<vmem>>, vector<1x128xf32>
      %c4_i32_55 = arith.constant 4 : i32
      %122 = arith.addi %12, %c4_i32_55 : i32
      %c2_i32_56 = arith.constant 2 : i32
      %123 = arith.addi %122, %c2_i32_56 : i32
      %124 = arith.index_cast %123 : i32 to index
      %125 = memref.load %arg1[%124] : memref<512xi32, #tpu.memory_space<smem>>
      %126 = arith.index_cast %125 : i32 to index
      %c0_57 = arith.constant 0 : index
      %127 = vector.load %arg5[%126, %c0_57] : memref<64x128xf32, #tpu.memory_space<vmem>>, vector<1x128xf32>
      %c8_i32_58 = arith.constant 8 : i32
      %128 = arith.addi %12, %c8_i32_58 : i32
      %c2_i32_59 = arith.constant 2 : i32
      %129 = arith.addi %128, %c2_i32_59 : i32
      %130 = arith.index_cast %129 : i32 to index
      %131 = memref.load %arg1[%130] : memref<512xi32, #tpu.memory_space<smem>>
      %132 = arith.index_cast %131 : i32 to index
      %c0_60 = arith.constant 0 : index
      %133 = vector.load %arg5[%132, %c0_60] : memref<64x128xf32, #tpu.memory_space<vmem>>, vector<1x128xf32>
      %c12_i32_61 = arith.constant 12 : i32
      %134 = arith.addi %12, %c12_i32_61 : i32
      %c2_i32_62 = arith.constant 2 : i32
      %135 = arith.addi %134, %c2_i32_62 : i32
      %136 = arith.index_cast %135 : i32 to index
      %137 = memref.load %arg1[%136] : memref<512xi32, #tpu.memory_space<smem>>
      %138 = arith.index_cast %137 : i32 to index
      %c0_63 = arith.constant 0 : index
      %139 = vector.load %arg5[%138, %c0_63] : memref<64x128xf32, #tpu.memory_space<vmem>>, vector<1x128xf32>
      %c16_i32_64 = arith.constant 16 : i32
      %140 = arith.addi %12, %c16_i32_64 : i32
      %c2_i32_65 = arith.constant 2 : i32
      %141 = arith.addi %140, %c2_i32_65 : i32
      %142 = arith.index_cast %141 : i32 to index
      %143 = memref.load %arg1[%142] : memref<512xi32, #tpu.memory_space<smem>>
      %144 = arith.index_cast %143 : i32 to index
      %c0_66 = arith.constant 0 : index
      %145 = vector.load %arg5[%144, %c0_66] : memref<64x128xf32, #tpu.memory_space<vmem>>, vector<1x128xf32>
      %c20_i32_67 = arith.constant 20 : i32
      %146 = arith.addi %12, %c20_i32_67 : i32
      %c2_i32_68 = arith.constant 2 : i32
      %147 = arith.addi %146, %c2_i32_68 : i32
      %148 = arith.index_cast %147 : i32 to index
      %149 = memref.load %arg1[%148] : memref<512xi32, #tpu.memory_space<smem>>
      %150 = arith.index_cast %149 : i32 to index
      %c0_69 = arith.constant 0 : index
      %151 = vector.load %arg5[%150, %c0_69] : memref<64x128xf32, #tpu.memory_space<vmem>>, vector<1x128xf32>
      %c24_i32_70 = arith.constant 24 : i32
      %152 = arith.addi %12, %c24_i32_70 : i32
      %c2_i32_71 = arith.constant 2 : i32
      %153 = arith.addi %152, %c2_i32_71 : i32
      %154 = arith.index_cast %153 : i32 to index
      %155 = memref.load %arg1[%154] : memref<512xi32, #tpu.memory_space<smem>>
      %156 = arith.index_cast %155 : i32 to index
      %c0_72 = arith.constant 0 : index
      %157 = vector.load %arg5[%156, %c0_72] : memref<64x128xf32, #tpu.memory_space<vmem>>, vector<1x128xf32>
      %c28_i32_73 = arith.constant 28 : i32
      %158 = arith.addi %12, %c28_i32_73 : i32
      %c2_i32_74 = arith.constant 2 : i32
      %159 = arith.addi %158, %c2_i32_74 : i32
      %160 = arith.index_cast %159 : i32 to index
      %161 = memref.load %arg1[%160] : memref<512xi32, #tpu.memory_space<smem>>
      %162 = arith.index_cast %161 : i32 to index
      %c0_75 = arith.constant 0 : index
      %163 = vector.load %arg5[%162, %c0_75] : memref<64x128xf32, #tpu.memory_space<vmem>>, vector<1x128xf32>
      %164 = tpu.concatenate %121, %127, %133, %139, %145, %151, %157, %163 in 0 : vector<1x128xf32>, vector<1x128xf32>, vector<1x128xf32>, vector<1x128xf32>, vector<1x128xf32>, vector<1x128xf32>, vector<1x128xf32>, vector<1x128xf32> -> vector<8x128xf32>
      %165 = arith.mulf %164, %6 : vector<8x128xf32>
      %166 = arith.addf %115, %165 : vector<8x128xf32>
      %c0_i32_76 = arith.constant 0 : i32
      %167 = arith.addi %12, %c0_i32_76 : i32
      %c3_i32 = arith.constant 3 : i32
      %168 = arith.addi %167, %c3_i32 : i32
      %169 = arith.index_cast %168 : i32 to index
      %170 = memref.load %arg1[%169] : memref<512xi32, #tpu.memory_space<smem>>
      %171 = arith.index_cast %170 : i32 to index
      %c0_77 = arith.constant 0 : index
      %172 = vector.load %arg5[%171, %c0_77] : memref<64x128xf32, #tpu.memory_space<vmem>>, vector<1x128xf32>
      %c4_i32_78 = arith.constant 4 : i32
      %173 = arith.addi %12, %c4_i32_78 : i32
      %c3_i32_79 = arith.constant 3 : i32
      %174 = arith.addi %173, %c3_i32_79 : i32
      %175 = arith.index_cast %174 : i32 to index
      %176 = memref.load %arg1[%175] : memref<512xi32, #tpu.memory_space<smem>>
      %177 = arith.index_cast %176 : i32 to index
      %c0_80 = arith.constant 0 : index
      %178 = vector.load %arg5[%177, %c0_80] : memref<64x128xf32, #tpu.memory_space<vmem>>, vector<1x128xf32>
      %c8_i32_81 = arith.constant 8 : i32
      %179 = arith.addi %12, %c8_i32_81 : i32
      %c3_i32_82 = arith.constant 3 : i32
      %180 = arith.addi %179, %c3_i32_82 : i32
      %181 = arith.index_cast %180 : i32 to index
      %182 = memref.load %arg1[%181] : memref<512xi32, #tpu.memory_space<smem>>
      %183 = arith.index_cast %182 : i32 to index
      %c0_83 = arith.constant 0 : index
      %184 = vector.load %arg5[%183, %c0_83] : memref<64x128xf32, #tpu.memory_space<vmem>>, vector<1x128xf32>
      %c12_i32_84 = arith.constant 12 : i32
      %185 = arith.addi %12, %c12_i32_84 : i32
      %c3_i32_85 = arith.constant 3 : i32
      %186 = arith.addi %185, %c3_i32_85 : i32
      %187 = arith.index_cast %186 : i32 to index
      %188 = memref.load %arg1[%187] : memref<512xi32, #tpu.memory_space<smem>>
      %189 = arith.index_cast %188 : i32 to index
      %c0_86 = arith.constant 0 : index
      %190 = vector.load %arg5[%189, %c0_86] : memref<64x128xf32, #tpu.memory_space<vmem>>, vector<1x128xf32>
      %c16_i32_87 = arith.constant 16 : i32
      %191 = arith.addi %12, %c16_i32_87 : i32
      %c3_i32_88 = arith.constant 3 : i32
      %192 = arith.addi %191, %c3_i32_88 : i32
      %193 = arith.index_cast %192 : i32 to index
      %194 = memref.load %arg1[%193] : memref<512xi32, #tpu.memory_space<smem>>
      %195 = arith.index_cast %194 : i32 to index
      %c0_89 = arith.constant 0 : index
      %196 = vector.load %arg5[%195, %c0_89] : memref<64x128xf32, #tpu.memory_space<vmem>>, vector<1x128xf32>
      %c20_i32_90 = arith.constant 20 : i32
      %197 = arith.addi %12, %c20_i32_90 : i32
      %c3_i32_91 = arith.constant 3 : i32
      %198 = arith.addi %197, %c3_i32_91 : i32
      %199 = arith.index_cast %198 : i32 to index
      %200 = memref.load %arg1[%199] : memref<512xi32, #tpu.memory_space<smem>>
      %201 = arith.index_cast %200 : i32 to index
      %c0_92 = arith.constant 0 : index
      %202 = vector.load %arg5[%201, %c0_92] : memref<64x128xf32, #tpu.memory_space<vmem>>, vector<1x128xf32>
      %c24_i32_93 = arith.constant 24 : i32
      %203 = arith.addi %12, %c24_i32_93 : i32
      %c3_i32_94 = arith.constant 3 : i32
      %204 = arith.addi %203, %c3_i32_94 : i32
      %205 = arith.index_cast %204 : i32 to index
      %206 = memref.load %arg1[%205] : memref<512xi32, #tpu.memory_space<smem>>
      %207 = arith.index_cast %206 : i32 to index
      %c0_95 = arith.constant 0 : index
      %208 = vector.load %arg5[%207, %c0_95] : memref<64x128xf32, #tpu.memory_space<vmem>>, vector<1x128xf32>
      %c28_i32_96 = arith.constant 28 : i32
      %209 = arith.addi %12, %c28_i32_96 : i32
      %c3_i32_97 = arith.constant 3 : i32
      %210 = arith.addi %209, %c3_i32_97 : i32
      %211 = arith.index_cast %210 : i32 to index
      %212 = memref.load %arg1[%211] : memref<512xi32, #tpu.memory_space<smem>>
      %213 = arith.index_cast %212 : i32 to index
      %c0_98 = arith.constant 0 : index
      %214 = vector.load %arg5[%213, %c0_98] : memref<64x128xf32, #tpu.memory_space<vmem>>, vector<1x128xf32>
      %215 = tpu.concatenate %172, %178, %184, %190, %196, %202, %208, %214 in 0 : vector<1x128xf32>, vector<1x128xf32>, vector<1x128xf32>, vector<1x128xf32>, vector<1x128xf32>, vector<1x128xf32>, vector<1x128xf32>, vector<1x128xf32> -> vector<8x128xf32>
      %216 = arith.mulf %215, %8 : vector<8x128xf32>
      %217 = arith.addf %166, %216 : vector<8x128xf32>
      %c8_i32_99 = arith.constant 8 : i32
      %218 = arith.muli %arg7, %c8_i32_99 : i32
      %219 = tpu.assume_multiple %218, 8 : i32
      %220 = arith.index_cast %219 : i32 to index
      %c0_100 = arith.constant 0 : index
      %221 = vector.load %arg6[%220, %c0_100] : memref<32x128xf32, #tpu.memory_space<vmem>>, vector<8x128xf32>
      tpu.vector_store %arg6[%220, %c0_100], %217 {strides = array<i32>} : memref<32x128xf32, #tpu.memory_space<vmem>>, vector<8x128xf32>,
    }
    %c4_i32_8 = arith.constant 4 : i32
    return
  }
  func.func @transform_0(%arg0: i32, %arg1: memref<512xi32, #tpu.memory_space<smem>>) -> (i32, i32, i32) {
    %c0_i32 = arith.constant 0 : i32
    %c0_i32_0 = arith.constant 0 : i32
    %c0_i32_1 = arith.constant 0 : i32
    %c0_i32_2 = arith.constant 0 : i32
    return %c0_i32, %c0_i32_0, %c0_i32_1 : i32, i32, i32
  }
  func.func @transform_1(%arg0: i32, %arg1: memref<512xi32, #tpu.memory_space<smem>>) -> (i32, i32) {
    %c0_i32 = arith.constant 0 : i32
    %c0_i32_0 = arith.constant 0 : i32
    %c0_i32_1 = arith.constant 0 : i32
    return %c0_i32, %c0_i32_0 : i32, i32
  }
  func.func @transform_2(%arg0: i32, %arg1: memref<512xi32, #tpu.memory_space<smem>>) -> (i32, i32) {
    %c0_i32 = arith.constant 0 : i32
    %c0_i32_0 = arith.constant 0 : i32
    %c0_i32_1 = arith.constant 0 : i32
    return %c0_i32, %c0_i32_0 : i32, i32
  }
  func.func @transform_3(%arg0: i32, %arg1: memref<512xi32, #tpu.memory_space<smem>>) -> (i32, i32) {
    %c0_i32 = arith.constant 0 : i32
    %c0_i32_0 = arith.constant 0 : i32
    %c0_i32_1 = arith.constant 0 : i32
    return %c0_i32, %c0_i32_0 : i32, i32
  }
  func.func @transform_4(%arg0: i32, %arg1: memref<512xi32, #tpu.memory_space<smem>>) -> (i32, i32) {
    %c0_i32 = arith.constant 0 : i32
    %c0_i32_0 = arith.constant 0 : i32
    return %arg0, %c0_i32 : i32, i32
  }
}

</mosaic_0001>

<bundles_post_ra>
// kernel: tpu_custom_call.1
= control target key start
LH: loop header
LB: loop body
LE: loop exit
PB: predicated region body
PF: predicated region fallthrough
CT: control target
= control target key end

     0   :  { %s1004_s21 = smov [#allocation3]   ;;  %s1350_s0 = inlined_call_operand.hbm [shape: s32[512], index: 0, kind: input, shape index: {}]   ;;  %s1351_s1 = inlined_call_operand.hbm [shape: f32[4,8,128], index: 1, kind: input, shape index: {}]   ;;  %s1352_s2 = inlined_call_operand.hbm [shape: f32[2000,128], index: 2, kind: input, shape index: {}]   ;;  %s1353_s3 = inlined_call_operand.hbm [shape: f32[64,128], index: 3, kind: input, shape index: {}]   ;;  %s1354_s4 = inlined_call_operand.hbm [shape: f32[64,128], index: 4, kind: input, shape index: {}]   ;;  %s1355_s5 = inlined_call_operand.hbm [shape: f32[128,128], index: 5, kind: output, shape index: {}]  }
   0x1   :  { %1362 = sst [smem:[#allocation22_spill]] %s1351_s1  ;;  %s11_s20 = sshll.u32 %s1350_s0, 4  ;;  %s12_s20 = int_to_ptr.hbm [resolvable:$true] %s11_s20 }
   0x2   :  { %1363 = sst [smem:[#allocation23_spill]] %s1352_s2 }
   0x3   :  { %1364 = sst [smem:[#allocation24_spill]] %s1353_s3 }
   0x4   :  { %1365 = sst [smem:[#allocation25_spill]] %s1354_s4 }
   0x5   :  { %14 = dma.hbm_to_smem %s12_s20, 64, %s1004_s21, [#allocation2] }
   0x6   :  { %966 = dma.done.wait [#allocation2], 64 }
   0x7   :  { %967 = vsyncadd [#allocation2], 4294967232 }
   0x8   :  { %17 = sfence }
   0x9   :  { %18 = vsyncpa [#allocation5], 0 }
   0xa   :  { %19 = vsyncpa [#allocation8], 0 }
   0xb   :  { %20 = vsyncpa [#allocation11], 0 }
   0xc   :  { %21 = vsyncpa [#allocation6], 0 }
   0xd   :  { %23 = vsyncpa [#allocation6 + $0x1], 0  ;;  %s1046_s22 = smov 0   ;;  %s1048_s23 = smov 0  }
   0xe   :  { %s1050_s24 = smov 0   ;;  %s1052_s25 = smov 0  }
   0xf LB: > { %1366 = sst [smem:[#allocation18_spill]] %s994_s24  ;;  %s1067_s0 = sadd.s32 4294967295, %s998_s25   ;;  %s998_s25 = sphi %s1052_s25, %s1385_s25   ;;  %s994_s24 = sphi %s1050_s24, %s1387_s24   ;;  %s990_s23 = sphi %s1048_s23, %s1389_s23   ;;  %s986_s22 = sphi %s1046_s22, %s1388_s22  }
  0x10   : > { %s672_s26 = sadd.s32 4294967294, %s998_s25   ;;  %s1071_s27 = sadd.s32 1, %s998_s25  }
  0x11   : > { %1367 = sst [smem:[#allocation19_spill]] %s1071_s27  ;;  %s120_s28 = sadd.s32 1, %s994_s24 }
  0x12   : > { %s117_s29 = ssub.s32 %s998_s25, %s1071_s27  ;;  %p130_p0 = scmp.ne.s32.totalorder %s994_s24, %s990_s23 }
  0x13   : > { %p118_p1 = scmp.eq.s32.totalorder %s117_s29, 0  ;;  %p131_p2 = scmp.eq.s32.totalorder %s1067_s0, 3 }
  0x14   : > { %p136_p3 = scmp.ne.s32.totalorder %s990_s23, %s986_s22  ;;  %p137_p4 = scmp.eq.s32.totalorder %s672_s26, 3 }
  0x15   : > { %s1082_s30 = scalar_select %p118_p1, %s994_s24, %s120_s28  }
  0x16   : > { %p1084_p5 = por %p131_p2, %p130_p0  ;;  %p1088_p6 = por %p137_p4, %p136_p3 }
  0x17   : > { %1368 = sst [smem:[#allocation20_spill]] %s1082_s30  ;;  %p673_p7 = scmp.ge.s32.totalorder %s998_s25, 1 }
  0x18   : > { %s1370_s7 = scalar_select %p1088_p6, 1, 0 }
  0x19   : > { %p144_p8 = scmp.lt.s32.totalorder %s998_s25, 5  ;;  %p728_p9 = scmp.eq.s32.totalorder %s1067_s0, 0 }
  0x1a   : > { %1371 = sst [smem:[#allocation21_spill]] %s1370_s7  ;;  %s1005_s16 = smov [#allocation7]  }
  0x1b   : > { %p1095_p10 = pnand %p673_p7, %p144_p8  ;;  %s1373_s2 = sld [smem:[#allocation23_spill]] }
  0x1c   : > { %s1374_s1 = sld [smem:[#allocation22_spill]]  ;;  %s171_s17 = sshll.u32 %s1005_s16, 4  ;;  %s172_s17 = int_to_ptr.vmem [resolvable:$true] %s171_s17 }
  0x1d   : > { %p711_p11 = pneg %p1095_p10  ;;  %s1006_s18 = smov 128  }
  0x1e   : > { %s1007_s19 = smov 8   ;;  %s1008_s20 = smov [#allocation4]  }
  0x1f   : > { %p1109_p12 = pnand %p728_p9, %p711_p11  ;;  %s157_s21 = sshll.u32 %s1008_s20, 4  ;;  %s158_s21 = int_to_ptr.vmem [resolvable:$true] %s157_s21 }
  0x20   : > { %s1376_s3 = sld [smem:[#allocation24_spill]]  ;;  %s1009_s13 = smov [#allocation9]  }
  0x21   : > { %s169_s11 = sshll.u32 %s1373_s2, 4  ;;  %s1377_s4 = sld [smem:[#allocation25_spill]]  ;;  %s170_s11 = int_to_ptr.hbm [resolvable:$true] %s169_s11 }
  0x22   : > { %s155_s14 = sshll.u32 %s1374_s1, 4  ;;  %s185_s16 = sshll.u32 %s1009_s13, 4  ;;  %s156_s14 = int_to_ptr.hbm [resolvable:$true] %s155_s14  ;;  %s186_s16 = int_to_ptr.vmem [resolvable:$true] %s185_s16 }
  0x23   : > { %717 = dma.hbm_to_vmem [thread:$0]  (!%p1109_p12), %s170_s11, 32000, %s172_s17, [#allocation8], %s1006_s18, %s1006_s18, %s1007_s19  }
  0x24   : > { %714 = dma.hbm_to_vmem [thread:$0]  (!%p1109_p12), %s156_s14, 512, %s158_s21, [#allocation5], %s1006_s18, %s1006_s18, %s1007_s19  }
  0x25   : > { %s1010_s11 = smov [#allocation10]   ;;  %215 = sbr.rel (%p1095_p10) target bundleno = 118 (0x76), region = 36 }
  0x26   : > { %s183_s29 = sshll.u32 %s1376_s3, 4  ;;  %s199_s17 = sshll.u32 %s1010_s11, 4  ;;  %s184_s29 = int_to_ptr.hbm [resolvable:$true] %s183_s29  ;;  %s200_s17 = int_to_ptr.vmem [resolvable:$true] %s199_s17 }
  0x27   : > { %s197_s12 = sshll.u32 %s1377_s4, 4  ;;  %s198_s12 = int_to_ptr.hbm [resolvable:$true] %s197_s12 }
  0x28   : > { %720 = dma.hbm_to_vmem [thread:$0]  (!%p1109_p12), %s184_s29, 1024, %s186_s16, [#allocation8], %s1006_s18, %s1006_s18, %s1007_s19  }
  0x29   : > { %723 = dma.hbm_to_vmem [thread:$0]  (!%p1109_p12), %s198_s12, 1024, %s200_s17, [#allocation11], %s1006_s18, %s1006_s18, %s1007_s19  }
  0x2a   : > { %969 = dma.done.wait (%p728_p9), [#allocation5], 512  }
  0x2b   : > { %971 = vsyncadd (%p728_p9), [#allocation5], 4294966784 }
  0x2c   : > { %973 = dma.done.wait (%p728_p9), [#allocation8], 33024  }
  0x2d   : > { %975 = vsyncadd (%p728_p9), [#allocation8], 4294934272 }
  0x2e   : > { %977 = dma.done.wait (%p728_p9), [#allocation11], 1024  }
  0x2f   : > { %979 = vsyncadd (%p728_p9), [#allocation11], 4294966272  ;;  %s1356_s8 = sand.u32 1, %s990_s23   ;;  %v1147_v0 = vld [vmem:[#allocation4] sm:$0xff]  ;;  %v1149_v1 = vld [vmem:[#allocation4 + $0x8] sm:$0xff]  ;;  %s1156_s19 = smov 0  }
  0x30   : > { %s1145_s15 = sshll.u32 %s1356_s8, 5  ;;  %v1151_v2 = vld [vmem:[#allocation4 + $0x10] sm:$0xff]  ;;  %v1153_v3 = vld [vmem:[#allocation4 + $0x18] sm:$0xff] }
  0x31 LB: >> { %s1357_s20 = sshll.u32 %s1002_s19, 3  ;;  %s1378_s14 = sshll.u32 %s1067_s0, 5  ;;  %vm322_vm0 = vcmask 1040384   ;;  %vm324_vm1 = vcmask 1041408   ;;  %vm326_vm2 = vcmask 1042432   ;;  %vm328_vm3 = vcmask 1043456   ;;  %s1002_s19 = sphi %s1156_s19, %s266_s19  }
  0x32   : >> { %s268_s21 = sadd.s32 %s1357_s20, %s1378_s14  ;;  %vm330_vm4 = vcmask 1044480   ;;  %vm332_vm5 = vcmask 1045504   ;;  %vm334_vm6 = vcmask 1046528  }
  0x33   : >> { %s1166_s26 = sshll.u32 %s268_s21, 2 }
  0x34   : >> { %s1169_s28 = sld [smem:[#allocation3 + %s1166_s26]]  ;;  %s273_s29 = sadd.s32 4, %s1166_s26 }
  0x35   : >> { %s274_s9 = sld [smem:[#allocation3 + %s273_s29]]  ;;  %s277_s10 = sadd.s32 8, %s1166_s26 }
  0x36   : >> { %s1173_s12 = sld [smem:[#allocation3 + %s277_s10]]  ;;  %s281_s13 = sadd.s32 12, %s1166_s26 }
  0x37   : >> { %s1176_s16 = sld [smem:[#allocation3 + %s281_s13]]  ;;  %s285_s11 = sadd.s32 16, %s1166_s26 }
  0x38   : >> { %s1179_s17 = sld [smem:[#allocation3 + %s285_s11]]  ;;  %s289_s21 = sadd.s32 20, %s1166_s26 }
  0x39   : >> { %s1182_s8 = sld [smem:[#allocation3 + %s289_s21]]  ;;  %s293_s14 = sadd.s32 24, %s1166_s26 }
  0x3a   : >> { %s1185_s18 = sld [smem:[#allocation3 + %s293_s14]]  ;;  %s297_s29 = sadd.s32 28, %s1166_s26 }
  0x3b   : >> { %s1188_s20 = sld [smem:[#allocation3 + %s297_s29]]  ;;  %s338_s10 = sadd.s32 1, %s1166_s26 }
  0x3c   : >> { %s1191_s1 = sld [smem:[#allocation3 + %s338_s10]]  ;;  %s342_s13 = sadd.s32 5, %s1166_s26 }
  0x3d   : >> { %s343_s2 = sld [smem:[#allocation3 + %s342_s13]]  ;;  %s346_s11 = sadd.s32 9, %s1166_s26 }
  0x3e   : >> { %s350_s3 = sadd.s32 13, %s1166_s26  ;;  %s347_s4 = sld [smem:[#allocation3 + %s346_s11]] }
  0x3f   : >> { %s1196_s30 = sld [smem:[#allocation3 + %s350_s3]]  ;;  %s354_s21 = sadd.s32 17, %s1166_s26 }
  0x40   : >> { %s1199_s24 = sld [smem:[#allocation3 + %s354_s21]]  ;;  %s358_s14 = sadd.s32 21, %s1166_s26 }
  0x41   : >> { %s362_s27 = sadd.s32 25, %s1166_s26  ;;  %s275_s29 = scalar_lea.vmem [#allocation7], %s274_s9 }
  0x42   : >> { %v276_v4 = vld [vmem:[%s275_s29] sm:$0x1]  ;;  %s1203_s10 = sld [smem:[#allocation3 + %s358_s14]]  ;;  %s366_s11 = sadd.s32 29, %s1166_s26 }
  0x43   : >> { %s344_s7 = scalar_lea.vmem [#allocation9], %s343_s2  ;;  %s1205_s13 = sld [smem:[#allocation3 + %s362_s27]]  ;;  %v302_v7 = vrot.slane %v276_v4, 7 }
  0x44   : >> { %v345_v5 = vld [vmem:[%s344_s7] sm:$0x1]  ;;  %s279_s3 = scalar_lea.vmem [#allocation7], %s1173_s12  ;;  %s1209_s21 = sld [smem:[#allocation3 + %s366_s11]] }
  0x45   : >> { %v280_v6 = vld [vmem:[%s279_s3] sm:$0x1]  ;;  %s348_s9 = scalar_lea.vmem [#allocation9], %s347_s4  ;;  %v371_v9 = vrot.slane %v345_v5, 7  ;;  %s400_s14 = sadd.s32 2, %s1166_s26 }
  0x46   : >> { %v349_v8 = vld [vmem:[%s348_s9] sm:$0x1]  ;;  %s271_s29 = scalar_lea.vmem [#allocation7], %s1169_s28  ;;  %s340_s2 = scalar_lea.vmem [#allocation9], %s1191_s1  ;;  %v305_v13 = vrot.slane %v280_v6, 6 }
  0x47   : >> { %v272_v10 = vld [vmem:[%s271_s29] sm:$0x1]  ;;  %s1214_s27 = sld [smem:[#allocation3 + %s400_s14]]  ;;  %s283_s7 = scalar_lea.vmem [#allocation7], %s1176_s16  ;;  %v374_v15 = vrot.slane %v349_v8, 6 }
  0x48   : >> { %v341_v11 = vld [vmem:[%s340_s2] sm:$0x1]  ;;  %s404_s12 = sadd.s32 6, %s1166_s26  ;;  %s408_s11 = sadd.s32 10, %s1166_s26  ;;  %v323_v16 = vsel %vm322_vm0, %v272_v10, %v302_v7 }
  0x49   : >> { %v284_v12 = vld [vmem:[%s283_s7] sm:$0x1]  ;;  %s352_s3 = scalar_lea.vmem [#allocation9], %s1196_s30  ;;  %s1220_s4 = sld [smem:[#allocation3 + %s404_s12]]  ;;  %v391_v17 = vsel %vm322_vm0, %v341_v11, %v371_v9  ;;  %v325_v22 = vsel %vm324_vm1, %v323_v16, %v305_v13 }
  0x4a   : >> { %v353_v14 = vld [vmem:[%s352_s3] sm:$0x1]  ;;  %s1224_s1 = sld [smem:[#allocation3 + %s408_s11]]  ;;  %s287_s28 = scalar_lea.vmem [#allocation7], %s1179_s17  ;;  %v308_v19 = vrot.slane %v284_v12, 5  ;;  %v392_v23 = vsel %vm324_vm1, %v391_v17, %v374_v15 }
  0x4b   : >> { %v288_v18 = vld [vmem:[%s287_s28] sm:$0x1]  ;;  %s412_s16 = sadd.s32 14, %s1166_s26  ;;  %s356_s30 = scalar_lea.vmem [#allocation9], %s1199_s24  ;;  %v377_v21 = vrot.slane %v353_v14, 5 }
  0x4c   : >> { %v357_v20 = vld [vmem:[%s356_s30] sm:$0x1]  ;;  %s1229_s9 = sld [smem:[#allocation3 + %s412_s16]]  ;;  %s416_s14 = sadd.s32 18, %s1166_s26  ;;  %v311_v26 = vrot.slane %v288_v18, 4  ;;  %v327_v29 = vsel %vm326_vm2, %v325_v22, %v308_v19 }
  0x4d   : >> { %s1234_s29 = sld [smem:[#allocation3 + %s416_s14]]  ;;  %s291_s17 = scalar_lea.vmem [#allocation7], %s1182_s8  ;;  %v380_v28 = vrot.slane %v357_v20, 4  ;;  %v393_v30 = vsel %vm326_vm2, %v392_v23, %v377_v21 }
  0x4e   : >> { %v292_v24 = vld [vmem:[%s291_s17] sm:$0x1]  ;;  %s420_s24 = sadd.s32 22, %s1166_s26  ;;  %s424_s2 = sadd.s32 26, %s1166_s26  ;;  %v329_v40 = vsel %vm328_vm3, %v327_v29, %v311_v26 }
  0x4f   : >> { %s295_s7 = scalar_lea.vmem [#allocation7], %s1185_s18  ;;  %s360_s12 = scalar_lea.vmem [#allocation9], %s1203_s10  ;;  %v314_v33 = vrot.slane %v292_v24, 3  ;;  %v394_v41 = vsel %vm328_vm3, %v393_v30, %v380_v28 }
  0x50   : >> { %v296_v25 = vld [vmem:[%s295_s7] sm:$0x1]  ;;  %s1241_s11 = sld [smem:[#allocation3 + %s420_s24]]  ;;  %s402_s8 = scalar_lea.vmem [#allocation10], %s1214_s27 }
  0x51   : >> { %v361_v27 = vld [vmem:[%s360_s12] sm:$0x1]  ;;  %s406_s3 = scalar_lea.vmem [#allocation10], %s1220_s4  ;;  %s1247_s18 = sld [smem:[#allocation3 + %s424_s2]]  ;;  %v317_v44 = vrot.slane %v296_v25, 2  ;;  %v331_v51 = vsel %vm330_vm4, %v329_v40, %v314_v33 }
  0x52   : >> { %v403_v31 = vld [vmem:[%s402_s8] sm:$0x1]  ;;  %s410_s10 = scalar_lea.vmem [#allocation10], %s1224_s1  ;;  %s428_s28 = sadd.s32 30, %s1166_s26  ;;  %v383_v37 = vrot.slane %v361_v27, 3 }
  0x53   : >> { %v407_v32 = vld [vmem:[%s406_s3] sm:$0x1]  ;;  %s462_s16 = sadd.s32 3, %s1166_s26  ;;  %s364_s30 = scalar_lea.vmem [#allocation9], %s1205_s13  ;;  %v333_v60 = vsel %vm332_vm5, %v331_v51, %v317_v44 }
  0x54   : >> { %v411_v34 = vld [vmem:[%s410_s10] sm:$0x1]  ;;  %v433_v35 = vrot.slane %v407_v32, 7  ;;  %s1253_s14 = sld [smem:[#allocation3 + %s428_s28]]  ;;  %s299_s27 = scalar_lea.vmem [#allocation7], %s1188_s20  ;;  %v395_v52 = vsel %vm330_vm4, %v394_v41, %v383_v37 }
  0x55   : >> { %v365_v36 = vld [vmem:[%s364_s30] sm:$0x1]  ;;  %v436_v38 = vrot.slane %v411_v34, 6  ;;  %s414_s4 = scalar_lea.vmem [#allocation10], %s1229_s9  ;;  %s1260_s1 = sld [smem:[#allocation3 + %s462_s16]] }
  0x56   : >> { %v300_v39 = vld [vmem:[%s299_s27] sm:$0x1]  ;;  %v453_v43 = vsel %vm322_vm0, %v403_v31, %v433_v35  ;;  %s418_s13 = scalar_lea.vmem [#allocation10], %s1234_s29  ;;  %s466_s20 = sadd.s32 7, %s1166_s26  ;;  %v386_v49 = vrot.slane %v365_v36, 2 }
  0x57   : >> { %v415_v42 = vld [vmem:[%s414_s4] sm:$0x1]  ;;  %v454_v47 = vsel %vm324_vm1, %v453_v43, %v436_v38  ;;  %s470_s17 = sadd.s32 11, %s1166_s26  ;;  %s368_s24 = scalar_lea.vmem [#allocation9], %s1209_s21  ;;  %v320_v58 = vrot.slane %v300_v39, 1 }
  0x58   : >> { %v419_v45 = vld [vmem:[%s418_s13] sm:$0x1]  ;;  %v439_v46 = vrot.slane %v415_v42, 5  ;;  %s1267_s9 = sld [smem:[#allocation3 + %s466_s20]]  ;;  %s422_s29 = scalar_lea.vmem [#allocation10], %s1241_s11  ;;  %v396_v61 = vsel %vm332_vm5, %v395_v52, %v386_v49 }
  0x59   : >> { %v369_v48 = vld [vmem:[%s368_s24] sm:$0x1]  ;;  %v442_v50 = vrot.slane %v419_v45, 4  ;;  %s1273_s2 = sld [smem:[#allocation3 + %s470_s17]]  ;;  %s426_s21 = scalar_lea.vmem [#allocation10], %s1247_s18  ;;  %v335_v6 = vsel %vm334_vm6, %v333_v60, %v320_v58 }
  0x5a   : >> { %v423_v53 = vld [vmem:[%s422_s29] sm:$0x1]  ;;  %v455_v54 = vsel %vm326_vm2, %v454_v47, %v439_v46  ;;  %s474_s7 = sadd.s32 15, %s1166_s26  ;;  %s478_s12 = sadd.s32 19, %s1166_s26  ;;  %v389_v59 = vrot.slane %v369_v48, 1  ;;  %v336_v14 = vmul.f32 %v335_v6, %v1147_v0 }
  0x5b   : >> { %v427_v55 = vld [vmem:[%s426_s21] sm:$0x1]  ;;  %v445_v56 = vrot.slane %v423_v53, 3  ;;  %v456_v57 = vsel %vm328_vm3, %v455_v54, %v442_v50  ;;  %s1279_s8 = sld [smem:[#allocation3 + %s474_s7]]  ;;  %s430_s11 = scalar_lea.vmem [#allocation10], %s1253_s14 }
  0x5c   : >> { %v431_v62 = vld [vmem:[%s430_s11] sm:$0x1]  ;;  %v448_v63 = vrot.slane %v427_v55, 2  ;;  %s479_s3 = sld [smem:[#allocation3 + %s478_s12]]  ;;  %s482_s18 = sadd.s32 23, %s1166_s26  ;;  %v397_v7 = vsel %vm334_vm6, %v396_v61, %v389_v59 }
  0x5d   : >> { %v457_v4 = vsel %vm330_vm4, %v456_v57, %v445_v56  ;;  %s486_s10 = sadd.s32 27, %s1166_s26  ;;  %v451_v5 = vrot.slane %v431_v62, 1  ;;  %s483_s28 = sld [smem:[#allocation3 + %s482_s18]]  ;;  %v398_v15 = vmul.f32 %v397_v7, %v1149_v1 }
  0x5e   : >> { %s464_s16 = scalar_lea.vmem [#allocation10], %s1260_s1  ;;  %s468_s30 = scalar_lea.vmem [#allocation10], %s1267_s9  ;;  %v458_v10 = vsel %vm332_vm5, %v457_v4, %v448_v63 }
  0x5f   : >> { %v465_v8 = vld [vmem:[%s464_s16] sm:$0x1]  ;;  %s487_s14 = sld [smem:[#allocation3 + %s486_s10]]  ;;  %s472_s27 = scalar_lea.vmem [#allocation10], %s1273_s2  ;;  %v459_v18 = vsel %vm334_vm6, %v458_v10, %v451_v5  ;;  %v399_v25 = vadd.f32 %v398_v15, %v336_v14 }
  0x60   : >> { %v469_v9 = vld [vmem:[%s468_s30] sm:$0x1]  ;;  %s490_s4 = sadd.s32 31, %s1166_s26  ;;  %v460_v26 = vmul.f32 %v459_v18, %v1151_v2  ;;  %s1379_s9 = sshll.u32 %s1002_s19, 3 }
  0x61   : >> { %v473_v11 = vld [vmem:[%s472_s27] sm:$0x1]  ;;  %v495_v12 = vrot.slane %v469_v9, 7  ;;  %s491_s13 = sld [smem:[#allocation3 + %s490_s4]]  ;;  %s476_s20 = scalar_lea.vmem [#allocation10], %s1279_s8 }
  0x62   : >> { %v498_v13 = vrot.slane %v473_v11, 6  ;;  %v477_v16 = vld [vmem:[%s476_s20] sm:$0x1]  ;;  %s480_s1 = scalar_lea.vmem [#allocation10], %s479_s3  ;;  %v461_v35 = vadd.f32 %v460_v26, %v399_v25  ;;  %s1380_s29 = scalar_lea.vmem [#allocation12], %s1145_s15 }
  0x63   : >> { %v515_v17 = vsel %vm322_vm0, %v465_v8, %v495_v12  ;;  %v481_v19 = vld [vmem:[%s480_s1] sm:$0x1]  ;;  %v501_v20 = vrot.slane %v477_v16, 5  ;;  %s484_s26 = scalar_lea.vmem [#allocation10], %s483_s28  ;;  %s524_s2 = scalar_lea.vmem %s1380_s29, %s1379_s9 [#allocation12] }
  0x64   : >> { %v516_v21 = vsel %vm324_vm1, %v515_v17, %v498_v13  ;;  %v504_v22 = vrot.slane %v481_v19, 4  ;;  %v485_v23 = vld [vmem:[%s484_s26] sm:$0x1]  ;;  %s266_s19 = sadd.s32 1, %s1002_s19  }
  0x65   : >> { %v517_v24 = vsel %vm326_vm2, %v516_v21, %v501_v20  ;;  %s488_s17 = scalar_lea.vmem [#allocation10], %s487_s14  ;;  %v507_v28 = vrot.slane %v485_v23, 3  ;;  %p263_p13 = scmp.ge.s32.totalorder %s266_s19, 4  }
  0x66   : >> { %v489_v27 = vld [vmem:[%s488_s17] sm:$0x1]  ;;  %v518_v29 = vsel %vm328_vm3, %v517_v24, %v504_v22  ;;  %s1381_s21 = sshll.u32 (%p263_p13), %s1067_s0, 5  ;;  %s1382_s11 = scalar_lea.vmem (%p263_p13), [#allocation12], %s1145_s15 }
  0x67   : >> { %v510_v30 = vrot.slane %v489_v27, 2  ;;  %s492_s24 = scalar_lea.vmem [#allocation10], %s491_s13  ;;  %v519_v32 = vsel %vm330_vm4, %v518_v29, %v507_v28  ;;  %s538_s8 = scalar_lea.hbm (%p263_p13), %s1355_s5, %s1381_s21 }
  0x68   : >> { %v493_v31 = vld [vmem:[%s492_s24] sm:$0x1]  ;;  %s539_s3 = sshll.u32 (%p263_p13), %s1382_s11, 4  ;;  %s541_s18 = sshll.u32 (%p263_p13), %s538_s8, 4  ;;  %s540_s3 = int_to_ptr.vmem [resolvable:$true] %s539_s3  ;;  %s542_s18 = int_to_ptr.hbm [resolvable:$true] %s541_s18 }
  0x69   : >> { %v513_v33 = vrot.slane %v493_v31, 1  ;;  %v520_v34 = vsel %vm332_vm5, %v519_v32, %v510_v30  ;;  %s1383_s10 = sand.u32 (%p263_p13), 1, %s990_s23   ;;  %s932_s16 = sshra.s32 (%p263_p13), %s542_s18, 4  ;;  %s933_s16 = int_to_ptr.hbm [resolvable:$true] %s932_s16 }
  0x6a   : > { %s527_s28 = scalar_lea.sflag (%p263_p13), [#allocation6], %s1383_s10  ;;  %s934_s19 = scalar_lea.hbm (%p263_p13), %s933_s16, 32 }
  0x6b   : >> { %v521_v36 = vsel %vm334_vm6, %v520_v34, %v513_v33  ;;  %p935_p0 = scmp.ne.s32.totalorder (%p263_p13), %s933_s16, %s934_s19  ;;  %s938_s14 = scalar_lea.hbm (%p263_p13), %s1355_s5, 128 }
  0x6c   : >> { %v522_v37 = vmul.f32 %v521_v36, %v1153_v3  ;;  %265 = sbr.rel (!%p263_p13) target bundleno = 49 (0x31), region = 128  ;;  %p939_p3 = scmp.lt.s32.totalorder (%p263_p13), %s933_s16, %s1355_s5 }
  0x6d   : > { %p936_p1 = pnand (%p263_p13), %p935_p0, %p1084_p5  ;;  %p940_p4 = scmp.lt.s32.totalorder (%p263_p13), %s938_s14, %s934_s19 }
  0x6e   : >> { %v523_v38 = vadd.f32 %v522_v37, %v461_v35 }
  0x6f   : > { %p937_p2 = pneg (%p263_p13), %p936_p1  ;;  %p941_p7 = por (%p263_p13), %p940_p4, %p939_p3 }
  0x70   : >> { %525 = vst [vmem:[%s524_s2] sm:$0xff] %v523_v38 }
  0x71   : > { %p942_p8 = pnand %p941_p7, %p937_p2 }
  0x73   : > { %945 = shalt.err (!%p942_p8)
}
  0x74   : > { %s1011_s15 = smov 128   ;;  %s1012_s13 = smov 8  }
  0x75   : > { %709 = dma.vmem_to_hbm [thread:$0]  (%p1084_p5), %s540_s3, 512, %s542_s18, %s527_s28, %s1011_s15, %s1011_s15, %s1012_s13  }
  0x76 PF: > { %p736_p9 = scmp.ge.s32.totalorder %s998_s25, 2  ;;  %s556_s1 = sand.u32 1, %s986_s22  }
  0x77   : > { %s557_s26 = scalar_lea.sflag [#allocation6], %s556_s1 }
  0x78   : > { %p725_p10 = pnand %p736_p9, %p1088_p6 }
  0x7a   : > { %p726_p11 = pneg %p725_p10 }
  0x7c   : > { %981 = dma.done.wait (%p726_p11), %s557_s26, 512  }
  0x7d   : > { %983 = vsyncadd (%p726_p11), %s557_s26, 4294966784  ;;  %s1385_s25 = sld [smem:[#allocation19_spill]]  ;;  %s1388_s22 = smov %s990_s23 }
  0x7e   : > { %s1386_s17 = sld [smem:[#allocation18_spill]] }
  0x7f   : > { %s1387_s24 = sld [smem:[#allocation20_spill]] }
  0x83   : > { %p26_p12 = scmp.ge.s32.totalorder %s1385_s25, 6  }
  0x84   : > { %s1389_s23 = smov %s1386_s17 }
  0x85   :  { %28 = sbr.rel (!%p26_p12) target bundleno = 15 (0xf), region = 139 }
  0x8a   :  { %563 = vsyncpa [#allocation5], 1 }
  0x8b   :  { %565 = vsyncpa [#allocation5 + $0x1], 1 }
  0x8c   :  { %566 = vsyncpa [#allocation8], 1 }
  0x8d   :  { %567 = vsyncpa [#allocation11], 1 }
  0x8e   :  { %568 = vsyncpa [#allocation6], 1 }
  0x8f   :  { %570 = vsyncpa [#allocation6 + $0x1], 1 }

</bundles_post_ra>
